<compile_context>
chip_gen: v6e
topology: v6e:2x2x1
jax: 0.10.0
libtpu: 0.0.40
codegen_flags: <defaults>
</compile_context>

<pallas_src>
import jax
import jax.numpy as jnp
from jax.experimental import pallas as pl
from jax.experimental.pallas import tpu as pltpu


# ----------------------------------------------------------------------------
# Primary path: aliased, zero-copy identity.
# ----------------------------------------------------------------------------
def _alias_noop_kernel(x_ref, o_ref):
    del x_ref
    # Output aliases the input buffer; no data movement is needed. touch()
    # pins ordering so the aliased output is considered produced by this call.
    pltpu.touch(o_ref)


def _identity_alias(x):
    return pl.pallas_call(
        _alias_noop_kernel,
        out_shape=jax.ShapeDtypeStruct(x.shape, x.dtype),
        in_specs=[pl.BlockSpec(memory_space=pl.ANY)],
        out_specs=pl.BlockSpec(memory_space=pl.ANY),
        input_output_aliases={0: 0},
        compiler_params=pltpu.CompilerParams(has_side_effects=True),
    )(x)


# ----------------------------------------------------------------------------
# Fallback path: tuned, software-pipelined tiled copy.
# ----------------------------------------------------------------------------
def _copy_kernel(x_ref, o_ref):
    o_ref[...] = x_ref[...]


def _sublane_multiple(dtype):
    itemsize = jnp.dtype(dtype).itemsize
    return max(8, 32 // max(1, itemsize))  # f32->8, bf16->16, int8/fp8->32


def _lane_dense_view(x):
    """Flatten x to 2D with a lane-dense (multiple-of-128) last dim if possible."""
    n = x.size
    for cand in (1024, 512, 256, 128):
        if n % cand == 0:
            return x.reshape(-1, cand)
    if x.ndim == 1:
        return x.reshape(1, -1)
    # TODO(synk): pathological case of a huge, non-128-divisible last dim is
    # not column-tiled here; all 128-divisible sizes take the branch above.
    return x.reshape(-1, x.shape[-1])


def _identity_copy(x):
    orig_shape = x.shape
    x2 = _lane_dense_view(x)
    R, C = x2.shape
    itemsize = jnp.dtype(x2.dtype).itemsize
    sub = _sublane_multiple(x2.dtype)

    # Budget with the lane-PADDED row size: VMEM pads the lane dim to 128, so
    # narrow last dims must be accounted at 128 lanes or the limit is blown.
    c_pad = ((C + 127) // 128) * 128
    row_bytes = c_pad * itemsize
    total_bytes = R * row_bytes

    target_tile_bytes = 8 * 1024 * 1024  # ~2.5 us of DMA on v7x, ~6 us on v6e

    if R <= sub or total_bytes <= (1 << 20):
        TR = R  # single full-extent tile (full dim is always a legal block dim)
    else:
        rows = max(sub, target_tile_bytes // row_bytes)
        TR = (rows // sub) * sub
        if TR >= R:
            # Whole array fits in one target tile: still split in two so both
            # v7x TensorCores get work.
            TR = ((pl.cdiv(R, 2) + sub - 1) // sub) * sub
    num_row_tiles = pl.cdiv(R, TR)

    tile_bytes = TR * c_pad * itemsize
    # 2 (in) + 2 (out) double-buffered tiles + margin, capped under v7x's
    # 64 MiB physical VMEM; floor at the 32 MiB default scoped limit.
    vmem_limit = min(4 * tile_bytes + (8 << 20), 64 << 20)
    vmem_limit = max(vmem_limit, 32 << 20)

    out2 = pl.pallas_call(
        _copy_kernel,
        out_shape=jax.ShapeDtypeStruct((R, C), x2.dtype),
        grid=(num_row_tiles,),
        in_specs=[pl.BlockSpec((TR, C), lambda i: (i, 0))],
        out_specs=pl.BlockSpec((TR, C), lambda i: (i, 0)),
        compiler_params=pltpu.CompilerParams(
            dimension_semantics=("parallel",),
            vmem_limit_bytes=vmem_limit,
        ),
        cost_estimate=pl.CostEstimate(
            flops=0,
            transcendentals=0,
            bytes_accessed=2 * R * C * itemsize,
        ),
    )(x2)
    return out2.reshape(orig_shape)


# ----------------------------------------------------------------------------
# PrintLayer.forward
# ----------------------------------------------------------------------------
def print_layer_forward(x, *, force_copy=False):
    """Equivalent of PrintLayer.forward: print the shape, return x unchanged."""
    # Shapes are static, so the formatted string is fixed at trace time, but
    # jax.debug.print makes the print fire on every execution (also under jit).
    jax.debug.print("torch.Size({})".format(list(x.shape)))

    if x.size == 0 or x.ndim == 0:
        return x

    if not force_copy:
        try:
            return _identity_alias(x)
        except Exception:
            # TODO(synk): drop this fallback once aliased ANY-space no-op
            # bodies are guaranteed to lower on all deployed jaxlib versions.
            pass
    return _identity_copy(x)


if __name__ == "__main__":
    import numpy as np

    key = jax.random.PRNGKey(0)
    # Small NCHW input consistent with a conv-style module: batch=2, C=4, 16x16
    x = jax.random.normal(key, (2, 4, 16, 16), dtype=jnp.float32)
    x_host = np.asarray(x)  # host snapshot: robust against any buffer aliasing

    # Primary (zero-copy, aliased) path.
    y = jax.block_until_ready(print_layer_forward(x))
    assert y.shape == x_host.shape
    assert y.dtype == x_host.dtype
    assert np.array_equal(np.asarray(y), x_host)

    # Tuned tiled-copy fallback path, exercised explicitly for coverage.
    x_copy_in = jnp.asarray(x_host)
    y2 = jax.block_until_ready(print_layer_forward(x_copy_in, force_copy=True))
    assert y2.shape == x_host.shape
    assert y2.dtype == x_host.dtype
    assert np.array_equal(np.asarray(y2), x_host)

    print("KERNEL_OK")
</pallas_src>

<mosaic_0001>
module attributes {stable_mosaic.version = 11 : i64} {
  func.func @_alias_noop_kernel(%arg0: memref<2x4x16x16xf32, #tpu.memory_space<any>>, %arg1: memref<2x4x16x16xf32, #tpu.memory_space<any>>) attributes {dimension_semantics = [], scalar_prefetch = 0 : i64, scratch_operands = 0 : i64, tpu.core_type = #tpu.core_type<tc>} {
    return
  }
}

module attributes {stable_mosaic.version = 11 : i64} {
  func.func @_copy_kernel(%arg0: i32, %arg1: memref<2x1024xf32, #tpu.memory_space<vmem>>, %arg2: memref<2x1024xf32, #tpu.memory_space<vmem>>) attributes {dimension_semantics = [#tpu.dimension_semantics<parallel>], iteration_bounds = array<i64: 1>, scalar_prefetch = 0 : i64, scratch_operands = 0 : i64, tpu.core_type = #tpu.core_type<tc>, window_params = [{transform_indices = @transform_0, window_bounds = array<i64: 2, 1024>}, {transform_indices = @transform_1, window_bounds = array<i64: 2, 1024>}]} {
    %c0 = arith.constant 0 : index
    %c0_0 = arith.constant 0 : index
    %0 = vector.load %arg1[%c0, %c0_0] : memref<2x1024xf32, #tpu.memory_space<vmem>>, vector<2x1024xf32>
    %c0_1 = arith.constant 0 : index
    %c0_2 = arith.constant 0 : index
    %1 = vector.load %arg2[%c0_1, %c0_2] : memref<2x1024xf32, #tpu.memory_space<vmem>>, vector<2x1024xf32>
    tpu.vector_store %arg2[%c0_1, %c0_2], %0 {strides = array<i32>} : memref<2x1024xf32, #tpu.memory_space<vmem>>, vector<2x1024xf32>,
    return
  }
  func.func @transform_0(%arg0: i32) -> (i32, i32) {
    %c0_i32 = arith.constant 0 : i32
    %c0_i32_0 = arith.constant 0 : i32
    return %arg0, %c0_i32 : i32, i32
  }
  func.func @transform_1(%arg0: i32) -> (i32, i32) {
    %c0_i32 = arith.constant 0 : i32
    %c0_i32_0 = arith.constant 0 : i32
    return %arg0, %c0_i32 : i32, i32
  }
}

</mosaic_0001>

<bundles_post_ra>
// kernel: tpu_custom_call.1
= control target key start
LH: loop header
LB: loop body
LE: loop exit
PB: predicated region body
PF: predicated region fallthrough
CT: control target
= control target key end

     0   :  { %s16_s0 = inlined_call_operand.hbm [shape: f32[2,4,16,16], index: 0, kind: input, shape index: {}, may-alias: {0,1}]   ;;  %s17_s1 = inlined_call_operand.hbm [shape: f32[2,4,16,16], index: 1, kind: output, shape index: {}, may-alias: {0,1}]  }

// kernel: tpu_custom_call.1
= control target key start
LH: loop header
LB: loop body
LE: loop exit
PB: predicated region body
PF: predicated region fallthrough
CT: control target
= control target key end

     0   :  { %6 = vsyncpa [#allocation3], 0  ;;  %s104_s0 = inlined_call_operand.hbm [shape: f32[2,1024], index: 0, kind: input, shape index: {}]   ;;  %s105_s1 = inlined_call_operand.hbm [shape: f32[2,1024], index: 1, kind: output, shape index: {}]  }
   0x1   :  { %7 = vsyncpa [#allocation4], 0  ;;  %s86_s6 = smov [#allocation2]  }
   0x2   :  { %s14_s7 = sshll.u32 %s86_s6, 4  ;;  %s15_s7 = int_to_ptr.vmem [resolvable:$true] %s14_s7 }
   0x3   :  { %s50_s8 = scalar_lea.vmem %s15_s7, 256  ;;  %p55_p1 = scmp.lt.s32.totalorder %s15_s7, %s15_s7 }
   0x4   :  { %p51_p0 = scmp.ne.s32.totalorder %s15_s7, %s50_s8  ;;  %p56_p2 = scmp.lt.s32.totalorder %s50_s8, %s50_s8 }
   0x6   :  { %p57_p3 = por %p56_p2, %p55_p1 }
   0x8   :  { %p58_p4 = pnand %p57_p3, %p51_p0 }
   0xa   :  { %61 = shalt.err (!%p58_p4)
}
   0xb   :  { %17 = dma.hbm_to_vmem [thread:$0]  %s104_s0, 256, %s15_s7, [#allocation3]  }
   0xc   :  { %82 = dma.done.wait [#allocation3], 256  }
   0xd   :  { %83 = vsyncadd [#allocation3], 4294967040  ;;  %s87_s11 = smov [#allocation5]   ;;  %v21_v0 = vld [vmem:[#allocation2] sm:$0xff]  ;;  %v22_v1 = vld [vmem:[#allocation2 + $0x8] sm:$0xff] }
   0xe   :  { %s31_s12 = sshll.u32 %s87_s11, 4  ;;  %23 = vst [vmem:[#allocation5] sm:$0xff] %v21_v0  ;;  %24 = vst [vmem:[#allocation5 + $0x8] sm:$0xff] %v22_v1  ;;  %s32_s12 = int_to_ptr.vmem [resolvable:$true] %s31_s12 }
   0xf   :  { %s62_s13 = scalar_lea.vmem %s32_s12, 256  ;;  %p67_p6 = scmp.lt.s32.totalorder %s32_s12, %s32_s12 }
  0x10   :  { %p63_p5 = scmp.ne.s32.totalorder %s32_s12, %s62_s13  ;;  %p68_p7 = scmp.lt.s32.totalorder %s62_s13, %s62_s13 }
  0x12   :  { %p69_p8 = por %p68_p7, %p67_p6 }
  0x14   :  { %p70_p9 = pnand %p69_p8, %p63_p5 }
  0x16   :  { %73 = shalt.err (!%p70_p9)
}
  0x17   :  { %34 = dma.vmem_to_hbm [thread:$0]  %s32_s12, 256, %s105_s1, [#allocation4]  }
  0x18   :  { %84 = dma.done.wait [#allocation4], 256  }
  0x19   :  { %85 = vsyncadd [#allocation4], 4294967040 }
  0x1a   :  { %38 = vsyncpa [#allocation3], 1 }
  0x1b   :  { %39 = vsyncpa [#allocation4], 1 }

</bundles_post_ra>
